<compile_context>
chip_gen: v5e
topology: v5e:2x2
jax: 0.10.0
libtpu: 0.0.40
codegen_flags: <defaults>
</compile_context>

<pallas_src>
import functools
import math

import jax
import jax.numpy as jnp
from jax.experimental import pallas as pl
from jax.experimental.pallas import tpu as pltpu


def _round_up(x, m):
    return ((x + m - 1) // m) * m


def _sage_layer_kernel(adj_ref, xk_ref, xi_ref, wl_ref, wr_ref, b_ref,
                       out_ref, acc_ref, *, apply_relu):
    """One SAGEConv layer, tiled over (row-block i, adj-column-block k)."""
    k = pl.program_id(1)

    @pl.when(k == 0)
    def _():
        acc_ref[...] = jnp.zeros_like(acc_ref)
        # Root term + bias once per row block, written into the resident output
        # block early so the final step only has one matmul left to do.
        out_ref[...] = (jnp.dot(xi_ref[...], wr_ref[...],
                                preferred_element_type=jnp.float32)
                        + b_ref[...]).astype(out_ref.dtype)

    # Mean-aggregation reduction: acc[i_block] += adj[i_block, k_block] @ x[k_block]
    acc_ref[...] += jnp.dot(adj_ref[...], xk_ref[...],
                            preferred_element_type=jnp.float32)

    @pl.when(k == pl.num_programs(1) - 1)
    def _():
        out = out_ref[...] + jnp.dot(acc_ref[...].astype(wl_ref.dtype),
                                     wl_ref[...],
                                     preferred_element_type=jnp.float32)
        if apply_relu:
            out = jnp.maximum(out, 0.0)
        out_ref[...] = out.astype(out_ref.dtype)


def _sage_layer(adj_p, x_p, wl_p, wr_p, b_p, *, apply_relu, tile_n, tile_k):
    """One SAGEConv layer on pre-padded (and pre-cast) operands. Returns [Np, Hp] f32."""
    Np, Fp = x_p.shape
    Hp = wl_p.shape[1]
    assert Np % tile_n == 0 and Np % tile_k == 0
    grid = (Np // tile_n, Np // tile_k)

    itemsize = jnp.dtype(x_p.dtype).itemsize
    flops = 2 * (Np * Np * Fp + 2 * Np * Fp * Hp)
    bytes_accessed = (itemsize * (Np * Np + 2 * Np * Fp + 2 * Fp * Hp)
                      + 4 * (Hp + Np * Hp))

    kernel = functools.partial(_sage_layer_kernel, apply_relu=apply_relu)

    return pl.pallas_call(
        kernel,
        out_shape=jax.ShapeDtypeStruct((Np, Hp), jnp.float32),
        grid_spec=pltpu.PrefetchScalarGridSpec(
            num_scalar_prefetch=0,
            grid=grid,
            in_specs=[
                pl.BlockSpec((tile_n, tile_k), lambda i, k: (i, k)),  # adj tile
                pl.BlockSpec((tile_k, Fp), lambda i, k: (k, 0)),      # x rows (agg source)
                pl.BlockSpec((tile_n, Fp), lambda i, k: (i, 0)),      # x rows (root term)
                pl.BlockSpec((Fp, Hp), lambda i, k: (0, 0)),          # W_l
                pl.BlockSpec((Fp, Hp), lambda i, k: (0, 0)),          # W_r
                pl.BlockSpec((1, Hp), lambda i, k: (0, 0)),           # bias (f32)
            ],
            out_specs=pl.BlockSpec((tile_n, Hp), lambda i, k: (i, 0)),
            scratch_shapes=[pltpu.VMEM((tile_n, Fp), jnp.float32)],   # aggregation acc
        ),
        compiler_params=pltpu.CompilerParams(
            dimension_semantics=("parallel", "arbitrary"),
            vmem_limit_bytes=32 * 1024 * 1024,
        ),
        cost_estimate=pl.CostEstimate(flops=flops, transcendentals=0,
                                      bytes_accessed=bytes_accessed),
    )(adj_p, x_p, x_p, wl_p, wr_p, b_p)


def sage_gnn_forward(x, adj, params, *, tile_n=128, tile_k=128,
                     compute_dtype=jnp.float32):
    """x: [N, F] float32, adj: [N, N] float32 (row-normalized), params: dict."""
    N, F = x.shape
    H = params["wl1"].shape[1]

    LANE = 128
    Np = _round_up(N, math.lcm(tile_n, tile_k))
    Fp = _round_up(F, LANE)
    Hp = _round_up(H, LANE)

    cd = compute_dtype

    def pad2(a, r, c, dtype):
        return jnp.pad(a, ((0, r - a.shape[0]), (0, c - a.shape[1]))).astype(dtype)

    # Cast matmul operands to the compute dtype in the wrapper (halves DMA in
    # bf16 mode, removes per-tile casts from the kernel).  Bias stays f32.
    x_p = pad2(x, Np, Fp, cd)
    adj_p = pad2(adj, Np, Np, cd)
    wl1 = pad2(params["wl1"], Fp, Hp, cd)
    wr1 = pad2(params["wr1"], Fp, Hp, cd)
    b1 = pad2(params["b1"], 1, Hp, jnp.float32)
    wl2 = pad2(params["wl2"], Hp, Hp, cd)
    wr2 = pad2(params["wr2"], Hp, Hp, cd)
    b2 = pad2(params["b2"], 1, Hp, jnp.float32)

    h = _sage_layer(adj_p, x_p, wl1, wr1, b1, apply_relu=True,
                    tile_n=tile_n, tile_k=tile_k)
    out = _sage_layer(adj_p, h.astype(cd), wl2, wr2, b2, apply_relu=False,
                      tile_n=tile_n, tile_k=tile_k)
    return out[:N, :H]


def build_mean_adj(edge_index, num_nodes):
    """Dense row-normalized aggregation matrix from edge_index [2, E].

    edge_index[0] = source nodes (j), edge_index[1] = target nodes (i).
    adj[i, j] = 1 / deg(i) for each edge j -> i (mean aggregation).
    """
    src, dst = edge_index[0], edge_index[1]
    adj = jnp.zeros((num_nodes, num_nodes), jnp.float32).at[dst, src].add(1.0)
    deg = adj.sum(axis=-1, keepdims=True)
    return adj / jnp.maximum(deg, 1.0)


def init_params(key, in_channels, hidden_channels):
    """Deterministic synthetic parameters matching SAGEConv shapes.

    Stored as [in, out] (transposed vs torch.nn.Linear's [out, in])."""
    ks = jax.random.split(key, 6)

    def glorot(k, shape):
        limit = jnp.sqrt(6.0 / (shape[0] + shape[1]))
        return jax.random.uniform(k, shape, jnp.float32, -limit, limit)

    F, H = in_channels, hidden_channels
    return {
        "wl1": glorot(ks[0], (F, H)),
        "wr1": glorot(ks[1], (F, H)),
        "b1": jnp.zeros((1, H), jnp.float32),
        "wl2": glorot(ks[2], (H, H)),
        "wr2": glorot(ks[3], (H, H)),
        "b2": jnp.zeros((1, H), jnp.float32),
    }


def reference_forward(x, adj, params):
    """Pure-JAX reference for correctness check."""
    h = jnp.maximum(adj @ x @ params["wl1"] + x @ params["wr1"] + params["b1"], 0.0)
    return adj @ h @ params["wl2"] + h @ params["wr2"] + params["b2"]


if __name__ == "__main__":
    key = jax.random.PRNGKey(0)
    k_x, k_e, k_p = jax.random.split(key, 3)

    # Small demo shapes; num_nodes chosen so the padded graph (256) exercises a
    # real 2x2 grid (row blocks x adj-column reduction blocks) per layer.
    num_nodes = 200
    in_channels = 16
    hidden_channels = 32
    num_edges = 800

    x = jax.random.normal(k_x, (num_nodes, in_channels), jnp.float32)
    edge_index = jax.random.randint(k_e, (2, num_edges), 0, num_nodes, jnp.int32)

    adj = build_mean_adj(edge_index, num_nodes)
    params = init_params(k_p, in_channels, hidden_channels)

    out = jax.block_until_ready(sage_gnn_forward(x, adj, params))

    ref = reference_forward(x, adj, params)
    assert out.shape == (num_nodes, hidden_channels)
    assert jnp.allclose(out, ref, atol=1e-3, rtol=1e-3), float(
        jnp.max(jnp.abs(out - ref)))

    print("KERNEL_OK")
</pallas_src>

<mosaic_0001>
module attributes {stable_mosaic.version = 11 : i64} {
  func.func @_sage_layer_kernel(%arg0: i32, %arg1: i32, %arg2: memref<128x128xf32, #tpu.memory_space<vmem>>, %arg3: memref<128x128xf32, #tpu.memory_space<vmem>>, %arg4: memref<128x128xf32, #tpu.memory_space<vmem>>, %arg5: memref<128x128xf32, #tpu.memory_space<vmem>>, %arg6: memref<128x128xf32, #tpu.memory_space<vmem>>, %arg7: memref<1x128xf32, #tpu.memory_space<vmem>>, %arg8: memref<128x128xf32, #tpu.memory_space<vmem>>, %arg9: memref<128x128xf32, #tpu.memory_space<vmem>>) attributes {dimension_semantics = [#tpu.dimension_semantics<parallel>, #tpu.dimension_semantics<arbitrary>], iteration_bounds = array<i64: 2, 2>, scalar_prefetch = 0 : i64, scratch_operands = 1 : i64, tpu.core_type = #tpu.core_type<tc>, window_params = [{transform_indices = @transform_0, window_bounds = array<i64: 128, 128>}, {transform_indices = @transform_1, window_bounds = array<i64: 128, 128>}, {transform_indices = @transform_2, window_bounds = array<i64: 128, 128>}, {pipeline_mode = #tpu.pipeline_mode<synchronous>, transform_indices = @transform_3, window_bounds = array<i64: 128, 128>}, {pipeline_mode = #tpu.pipeline_mode<synchronous>, transform_indices = @transform_4, window_bounds = array<i64: 128, 128>}, {pipeline_mode = #tpu.pipeline_mode<synchronous>, transform_indices = @transform_5, window_bounds = array<i64: 1, 128>}, {transform_indices = @transform_6, window_bounds = array<i64: 128, 128>}]} {
    %c0_i32 = arith.constant 0 : i32
    %0 = arith.cmpi eq, %arg1, %c0_i32 : i32
    %1 = arith.extui %0 : i1 to i32
    %c0_i32_0 = arith.constant 0 : i32
    %2 = arith.cmpi ne, %1, %c0_i32_0 : i32
    scf.if %2 {
      %cst_9 = arith.constant 0.000000e+00 : f32
      %12 = vector.broadcast %cst_9 : f32 to vector<128x128xf32>
      %c0_10 = arith.constant 0 : index
      %c0_11 = arith.constant 0 : index
      %13 = vector.load %arg9[%c0_10, %c0_11] : memref<128x128xf32, #tpu.memory_space<vmem>>, vector<128x128xf32>
      tpu.vector_store %arg9[%c0_10, %c0_11], %12 {strides = array<i32>} : memref<128x128xf32, #tpu.memory_space<vmem>>, vector<128x128xf32>,
      %c0_12 = arith.constant 0 : index
      %c0_13 = arith.constant 0 : index
      %14 = vector.load %arg4[%c0_12, %c0_13] : memref<128x128xf32, #tpu.memory_space<vmem>>, vector<128x128xf32>
      %c0_14 = arith.constant 0 : index
      %c0_15 = arith.constant 0 : index
      %15 = vector.load %arg6[%c0_14, %c0_15] : memref<128x128xf32, #tpu.memory_space<vmem>>, vector<128x128xf32>
      %cst_16 = arith.constant dense<0.000000e+00> : vector<128x128xf32>
      %16 = tpu.matmul %14, %15, %cst_16 {dimension_numbers = #tpu.dot_dimension_numbers<[1], [0], [0], [1], [0, 0, 1, 1], [], []>} : vector<128x128xf32>, vector<128x128xf32>, vector<128x128xf32> -> vector<128x128xf32>
      %c0_17 = arith.constant 0 : index
      %c0_18 = arith.constant 0 : index
      %17 = vector.load %arg7[%c0_17, %c0_18] : memref<1x128xf32, #tpu.memory_space<vmem>>, vector<1x128xf32>
      %18 = vector.broadcast %17 : vector<1x128xf32> to vector<128x128xf32>
      %19 = arith.addf %16, %18 : vector<128x128xf32>
      %c0_19 = arith.constant 0 : index
      %c0_20 = arith.constant 0 : index
      %20 = vector.load %arg8[%c0_19, %c0_20] : memref<128x128xf32, #tpu.memory_space<vmem>>, vector<128x128xf32>
      tpu.vector_store %arg8[%c0_19, %c0_20], %19 {strides = array<i32>} : memref<128x128xf32, #tpu.memory_space<vmem>>, vector<128x128xf32>,
    } else {
    }
    %c0 = arith.constant 0 : index
    %c0_1 = arith.constant 0 : index
    %3 = vector.load %arg9[%c0, %c0_1] : memref<128x128xf32, #tpu.memory_space<vmem>>, vector<128x128xf32>
    %c0_2 = arith.constant 0 : index
    %c0_3 = arith.constant 0 : index
    %4 = vector.load %arg2[%c0_2, %c0_3] : memref<128x128xf32, #tpu.memory_space<vmem>>, vector<128x128xf32>
    %c0_4 = arith.constant 0 : index
    %c0_5 = arith.constant 0 : index
    %5 = vector.load %arg3[%c0_4, %c0_5] : memref<128x128xf32, #tpu.memory_space<vmem>>, vector<128x128xf32>
    %cst = arith.constant dense<0.000000e+00> : vector<128x128xf32>
    %6 = tpu.matmul %4, %5, %cst {dimension_numbers = #tpu.dot_dimension_numbers<[1], [0], [0], [1], [0, 0, 1, 1], [], []>} : vector<128x128xf32>, vector<128x128xf32>, vector<128x128xf32> -> vector<128x128xf32>
    %7 = arith.addf %3, %6 : vector<128x128xf32>
    %c0_6 = arith.constant 0 : index
    %c0_7 = arith.constant 0 : index
    %8 = vector.load %arg9[%c0_6, %c0_7] : memref<128x128xf32, #tpu.memory_space<vmem>>, vector<128x128xf32>
    tpu.vector_store %arg9[%c0_6, %c0_7], %7 {strides = array<i32>} : memref<128x128xf32, #tpu.memory_space<vmem>>, vector<128x128xf32>,
    %c1_i32 = arith.constant 1 : i32
    %9 = arith.cmpi eq, %arg1, %c1_i32 : i32
    %10 = arith.extui %9 : i1 to i32
    %c0_i32_8 = arith.constant 0 : i32
    %11 = arith.cmpi ne, %10, %c0_i32_8 : i32
    scf.if %11 {
      %c0_9 = arith.constant 0 : index
      %c0_10 = arith.constant 0 : index
      %12 = vector.load %arg8[%c0_9, %c0_10] : memref<128x128xf32, #tpu.memory_space<vmem>>, vector<128x128xf32>
      %c0_11 = arith.constant 0 : index
      %c0_12 = arith.constant 0 : index
      %13 = vector.load %arg9[%c0_11, %c0_12] : memref<128x128xf32, #tpu.memory_space<vmem>>, vector<128x128xf32>
      %c0_13 = arith.constant 0 : index
      %c0_14 = arith.constant 0 : index
      %14 = vector.load %arg5[%c0_13, %c0_14] : memref<128x128xf32, #tpu.memory_space<vmem>>, vector<128x128xf32>
      %cst_15 = arith.constant dense<0.000000e+00> : vector<128x128xf32>
      %15 = tpu.matmul %13, %14, %cst_15 {dimension_numbers = #tpu.dot_dimension_numbers<[1], [0], [0], [1], [0, 0, 1, 1], [], []>} : vector<128x128xf32>, vector<128x128xf32>, vector<128x128xf32> -> vector<128x128xf32>
      %16 = arith.addf %12, %15 : vector<128x128xf32>
      %cst_16 = arith.constant 0.000000e+00 : f32
      %17 = vector.broadcast %cst_16 : f32 to vector<128x128xf32>
      %18 = arith.maximumf %16, %17 : vector<128x128xf32>
      %c0_17 = arith.constant 0 : index
      %c0_18 = arith.constant 0 : index
      %19 = vector.load %arg8[%c0_17, %c0_18] : memref<128x128xf32, #tpu.memory_space<vmem>>, vector<128x128xf32>
      tpu.vector_store %arg8[%c0_17, %c0_18], %18 {strides = array<i32>} : memref<128x128xf32, #tpu.memory_space<vmem>>, vector<128x128xf32>,
    } else {
    }
    return
  }
  func.func @transform_0(%arg0: i32, %arg1: i32) -> (i32, i32) {
    %c0_i32 = arith.constant 0 : i32
    return %arg0, %arg1 : i32, i32
  }
  func.func @transform_1(%arg0: i32, %arg1: i32) -> (i32, i32) {
    %c0_i32 = arith.constant 0 : i32
    %c0_i32_0 = arith.constant 0 : i32
    return %arg1, %c0_i32 : i32, i32
  }
  func.func @transform_2(%arg0: i32, %arg1: i32) -> (i32, i32) {
    %c0_i32 = arith.constant 0 : i32
    %c0_i32_0 = arith.constant 0 : i32
    return %arg0, %c0_i32 : i32, i32
  }
  func.func @transform_3(%arg0: i32, %arg1: i32) -> (i32, i32) {
    %c0_i32 = arith.constant 0 : i32
    %c0_i32_0 = arith.constant 0 : i32
    %c0_i32_1 = arith.constant 0 : i32
    return %c0_i32, %c0_i32_0 : i32, i32
  }
  func.func @transform_4(%arg0: i32, %arg1: i32) -> (i32, i32) {
    %c0_i32 = arith.constant 0 : i32
    %c0_i32_0 = arith.constant 0 : i32
    %c0_i32_1 = arith.constant 0 : i32
    return %c0_i32, %c0_i32_0 : i32, i32
  }
  func.func @transform_5(%arg0: i32, %arg1: i32) -> (i32, i32) {
    %c0_i32 = arith.constant 0 : i32
    %c0_i32_0 = arith.constant 0 : i32
    %c0_i32_1 = arith.constant 0 : i32
    return %c0_i32, %c0_i32_0 : i32, i32
  }
  func.func @transform_6(%arg0: i32, %arg1: i32) -> (i32, i32) {
    %c0_i32 = arith.constant 0 : i32
    %c0_i32_0 = arith.constant 0 : i32
    return %arg0, %c0_i32 : i32, i32
  }
}

</mosaic_0001>

<bundles_post_ra>
// kernel: tpu_custom_call.1
= control target key start
LH: loop header
LB: loop body
LE: loop exit
PB: predicated region body
PF: predicated region fallthrough
CT: control target
= control target key end

     0   :  { %s2150_s0 = inlined_call_operand.hbm [shape: f32[256,256], index: 0, kind: input, shape index: {}]   ;;  %s2151_s1 = inlined_call_operand.hbm [shape: f32[256,128], index: 1, kind: input, shape index: {}]   ;;  %s2152_s2 = inlined_call_operand.hbm [shape: f32[256,128], index: 2, kind: input, shape index: {}]   ;;  %s2153_s3 = inlined_call_operand.hbm [shape: f32[128,128], index: 3, kind: input, shape index: {}]   ;;  %s2154_s4 = inlined_call_operand.hbm [shape: f32[128,128], index: 4, kind: input, shape index: {}]   ;;  %s2155_s5 = inlined_call_operand.vmem [shape: f32[1,128], index: 5, kind: input, shape index: {}]   ;;  %s2156_s6 = inlined_call_operand.hbm [shape: f32[256,128], index: 6, kind: output, shape index: {}]  }
   0x1   :  { %2166 = sst [smem:[#allocation26_spill]] %s2150_s0 }
   0x2   :  { %2167 = sst [smem:[#allocation27_spill]] %s2151_s1 }
   0x3   :  { %2168 = sst [smem:[#allocation28_spill]] %s2153_s3 }
   0x4   :  { %2169 = sst [smem:[#allocation29_spill]] %s2154_s4 }
   0x5   :  { %2170 = sst [smem:[#allocation30_spill]] %s2155_s5 }
   0x6   :  { %2171 = sst [smem:[#allocation31_spill]] %s2156_s6 }
   0x7   :  { %11 = vsyncpa [#allocation4], 0 }
   0x8   :  { %13 = vsyncpa [#allocation4 + $0x1], 0 }
   0x9   :  { %14 = vsyncpa [#allocation7], 0 }
   0xa   :  { %16 = vsyncpa [#allocation7 + $0x1], 0 }
   0xb   :  { %17 = vsyncpa [#allocation10], 0 }
   0xc   :  { %18 = vsyncpa [#allocation5], 0 }
   0xd   :  { %20 = vsyncpa [#allocation5 + $0x1], 0  ;;  %s1712_s21 = smov 0   ;;  %s1714_s22 = smov 0  }
   0xe   :  { %s1716_s23 = smov 0   ;;  %s1718_s24 = smov 0  }
   0xf   :  { %s1720_s25 = smov 0   ;;  %s1722_s26 = smov 0  }
  0x10   :  { %s1724_s27 = smov 0   ;;  %s1726_s28 = smov 0  }
  0x11   :  { %s1728_s29 = smov 0   ;;  %s1730_s30 = smov 0  }
  0x12   :  { %s1732_s7 = smov 0   ;;  %s1734_s8 = smov 0  }
  0x13   :  { %s1736_s9 = smov 0   ;;  %s1738_s10 = smov 0  }
  0x14 LB: > { %2172 = sst [smem:[#allocation18_spill]] %s1631_s25  ;;  %s1783_s11 = sadd.s32 4294967295, %s1667_s10   ;;  %s1667_s10 = sphi %s1738_s10, %s26_s10   ;;  %s1663_s9 = sphi %s1736_s9, %s2220_s9   ;;  %s1659_s8 = sphi %s1734_s8, %s2219_s8   ;;  %s1655_s7 = sphi %s1732_s7, %s2218_s7   ;;  %s1651_s30 = sphi %s1730_s30, %s2206_s30   ;;  %s1647_s29 = sphi %s1728_s29, %s2217_s29   ;;  %s1643_s28 = sphi %s1726_s28, %s2216_s28   ;;  %s1639_s27 = sphi %s1724_s27, %s2215_s27   ;;  %s1635_s26 = sphi %s1722_s26, %s2214_s26   ;;  %s1631_s25 = sphi %s1720_s25, %s2213_s25   ;;  %s1627_s24 = sphi %s1718_s24, %s2203_s24   ;;  %s1623_s23 = sphi %s1716_s23, %s2212_s23   ;;  %s1619_s22 = sphi %s1714_s22, %s2211_s22   ;;  %s1615_s21 = sphi %s1712_s21, %s2210_s21  }
  0x15   : > { %2173 = sst [smem:[#allocation19_spill]] %s1651_s30  ;;  %p1019_p0 = scmp.ge.s32.totalorder %s1667_s10, 1 }
  0x16   : > { %2174 = sst [smem:[#allocation20_spill]] %s1655_s7  ;;  %p61_p1 = scmp.eq.s32.totalorder %s1783_s11, 0 }
  0x17   : > { %2175 = sst [smem:[#allocation21_spill]] %s1659_s8  ;;  %p199_p2 = scmp.eq.s32.totalorder %s1783_s11, 3 }
  0x18   : > { %p212_p3 = scmp.lt.s32.totalorder %s1667_s10, 5  ;;  %s2176_s3 = sld [smem:[#allocation28_spill]] }
  0x19   : > { %s1669_s16 = smov [#allocation9]   ;;  %s2157_s19 = smov 128  }
  0x1a   : > { %p1792_p4 = pnand %p1019_p0, %p212_p3  ;;  %s225_s17 = sshll.u32 %s1669_s16, 4  ;;  %s226_s17 = int_to_ptr.vmem [resolvable:$true] %s225_s17 }
  0x1b   : > { %s2159_s20 = smov 8   ;;  %s35_s12 = sadd.s32 1, %s1659_s8 }
  0x1c   : > { %p1211_p5 = pneg %p1792_p4  ;;  %s38_s13 = sadd.s32 1, %s1663_s9 }
  0x1d   : > { %p36_p7 = scmp.ge.s32.totalorder %s35_s12, 2  ;;  %p55_p8 = scmp.eq.s32.totalorder %s1667_s10, 0 }
  0x1e   : > { %s223_s14 = sshll.u32 %s2176_s3, 4  ;;  %p1800_p6 = pnand %p1211_p5, %p61_p1  ;;  %s224_s14 = int_to_ptr.hbm [resolvable:$true] %s223_s14 }
  0x1f   : > { %s73_s16 = sadd.s32 1, %s1635_s26  ;;  %p80_p9 = scmp.ne.s32.totalorder %s1635_s26, %s1631_s25 }
  0x20   : > { %1214 = dma.hbm_to_vmem [thread:$0]  (!%p1800_p6), %s224_s14, 2048, %s226_s17, [#allocation10], %s2157_s19, %s2157_s19, %s2159_s20  }
  0x21   : > { %s2222_s12 = smov (%p36_p7, %s35_s12), 0  ;;  %s2224_s13 = smov (!%p36_p7, %s38_s13), %s1663_s9 }
  0x22   : > { %2179 = sst [smem:[#allocation22_spill]] %s2222_s12  ;;  %s43_s3 = ssub.s32 %s1659_s8, %s2222_s12 }
  0x23   : > { %p1822_p10 = por %p80_p9, %p55_p8  ;;  %p40_p11 = scmp.ge.s32.totalorder %s2224_s13, 2 }
  0x24   : > { %p71_p12 = scmp.eq.s32.totalorder %s43_s3, 0  ;;  %p86_p13 = scmp.ne.s32.totalorder %s1631_s25, %s1627_s24 }
  0x25   : > { %p1234_p0 = scmp.lt.s32.totalorder %s1667_s10, 4  ;;  %s2226_s13 = smov (%p40_p11, %s2224_s13), 0 }
  0x26   : > { %2181 = sst [smem:[#allocation23_spill]] %s2226_s13  ;;  %s1836_s19 = ssub.s32 %s1663_s9, %s2226_s13 }
  0x27   : > { %s1832_s17 = scalar_select %p71_p12, %s1635_s26, %s73_s16  }
  0x28   : > { %p1840_p3 = por %p86_p13, %p61_p1  ;;  %s44_s12 = sor.u32 %s43_s3, %s1836_s19 }
  0x29   : > { %2182 = sst [smem:[#allocation24_spill]] %s1832_s17  ;;  %p97_p5 = scmp.eq.s32.totalorder %s1836_s19, 0 }
  0x2a   : > { %p1846_p7 = scmp.eq.s32.totalorder %s44_s12, 0  ;;  %s280_s6 = sand.u32 1, %s1667_s10  }
  0x2b   : > { %s282_s16 = sand.u32 1, %s1635_s26   ;;  %s1048_s7 = sshll.u32 %s1659_s8, 7 }
  0x2c   : > { %s1027_s17 = sshll.u32 %s282_s16, 7  ;;  %s2185_s1 = sld [smem:[#allocation27_spill]] }
  0x2d   : > { %s284_s3 = scalar_lea.vmem [#allocation6], %s1027_s17  ;;  %p1222_p9 = pnand %p1234_p0, %p1822_p10 }
  0x2e   : > { %s292_s12 = sshll.u32 %s284_s3, 4  ;;  %s2186_s4 = sld [smem:[#allocation29_spill]]  ;;  %s293_s12 = int_to_ptr.vmem [resolvable:$true] %s292_s12 }
  0x2f   : > { %s1863_s16 = scalar_lea.sflag [#allocation7], %s280_s6  ;;  %s2187_s3 = smov 8  }
  0x30   : > { %s47_s14 = sadd.s32 1, %s1647_s29  ;;  %p54_p10 = scmp.ne.s32.totalorder %s1647_s29, %s1643_s28 }
  0x31   : > { %s1878_s5 = scalar_select %p1846_p7, %s1647_s29, %s47_s14  }
  0x32   : > { %s289_s30 = scalar_lea.hbm %s2185_s1, %s1048_s7  ;;  %s2188_s1 = smov 128  }
  0x33   : > { %s290_s25 = sshll.u32 %s289_s30, 4  ;;  %s1672_s30 = smov [#allocation11]   ;;  %s291_s25 = int_to_ptr.hbm [resolvable:$true] %s290_s25 }
  0x34   : > { %s237_s7 = sshll.u32 %s2186_s4, 4  ;;  %s239_s17 = sshll.u32 %s1672_s30, 4  ;;  %s238_s7 = int_to_ptr.hbm [resolvable:$true] %s237_s7  ;;  %s240_s17 = int_to_ptr.vmem [resolvable:$true] %s239_s17 }
  0x35   : > { %1224 = dma.hbm_to_vmem [thread:$0]  (!%p1222_p9), %s291_s25, 2048, %s293_s12, %s1863_s16, %s2188_s1, %s2188_s1, %s2187_s3  }
  0x36   : > { %1217 = dma.hbm_to_vmem [thread:$0]  (!%p1800_p6), %s238_s7, 2048, %s240_s17, [#allocation10], %s2188_s1, %s2188_s1, %s2187_s3  }
  0x37   : > { %2189 = sst [smem:[#allocation25_spill]] %s1878_s5  ;;  %p60_p11 = scmp.ne.s32.totalorder %s1643_s28, %s1639_s27 }
  0x38   : > { %s256_s6 = sand.u32 1, %s1647_s29   ;;  %s1047_s13 = sshll.u32 %s1663_s9, 5 }
  0x39   : > { %p56_p12 = por %p55_p8, %p54_p10  ;;  %p1890_p13 = por %p61_p1, %p60_p11 }
  0x3a   : > { %s1023_s18 = sshll.u32 %s256_s6, 7  ;;  %s265_s24 = sadd.s32 %s1659_s8, %s1047_s13 }
  0x3b   : > { %s1026_s12 = sshll.u32 %s265_s24, 3  ;;  %s260_s27 = scalar_lea.vmem [#allocation3], %s1023_s18 }
  0x3c   : > { %s270_s7 = sshll.u32 %s260_s27, 4  ;;  %s2191_s0 = sld [smem:[#allocation26_spill]]  ;;  %s271_s7 = int_to_ptr.vmem [resolvable:$true] %s270_s7 }
  0x3d   : > { %p1219_p6 = pnand %p1234_p0, %p56_p12  ;;  %s257_s13 = scalar_lea.sflag [#allocation4], %s256_s6 }
  0x3e   : > { %s1673_s8 = smov 256   ;;  %s1018_s18 = sadd.s32 4294967294, %s1667_s10  }
  0x3f   : > { %s99_s24 = sadd.s32 1, %s1623_s23  ;;  %p106_p7 = scmp.ne.s32.totalorder %s1623_s23, %s1619_s22 }
  0x40   : > { %s1909_s27 = scalar_select %p97_p5, %s1623_s23, %s99_s24  }
  0x41   : > { %p1913_p9 = por %p106_p7, %p55_p8  ;;  %p112_p10 = scmp.ne.s32.totalorder %s1619_s22, %s1615_s21 }
  0x42   : > { %s267_s14 = scalar_lea.hbm %s2191_s0, %s1026_s12  ;;  %p1921_p11 = por %p199_p2, %p106_p7 }
  0x43   : > { %s268_s4 = sshll.u32 %s267_s14, 4  ;;  %p205_p12 = scmp.eq.s32.totalorder %s1018_s18, 3  ;;  %s269_s4 = int_to_ptr.hbm [resolvable:$true] %s268_s4 }
  0x44   : > { %1221 = dma.hbm_to_vmem [thread:$0]  (!%p1219_p6), %s269_s4, 2048, %s271_s7, %s257_s13, %s1673_s8, %s2188_s1, %s2187_s3  }
  0x45   : > { %p1927_p6 = por %p112_p10, %p61_p1  ;;  %s304_s8 = sand.u32 1, %s1623_s23  }
  0x46   : > { %p1932_p5 = por %p205_p12, %p112_p10  ;;  %s1030_s7 = sshll.u32 %s304_s8, 7 }
  0x47   : > { %s1049_s30 = sshll.u32 %s1663_s9, 7  ;;  %s306_s24 = scalar_lea.vmem [#allocation8], %s1030_s7 }
  0x48   : > { %s311_s13 = scalar_lea.hbm %s2152_s2, %s1049_s30  ;;  %s314_s0 = sshll.u32 %s306_s24, 4  ;;  %s315_s0 = int_to_ptr.vmem [resolvable:$true] %s314_s0 }
  0x49   : > { %s312_s5 = sshll.u32 %s311_s13, 4  ;;  %p1225_p2 = pnand %p1234_p0, %p1913_p9  ;;  %s313_s5 = int_to_ptr.hbm [resolvable:$true] %s312_s5 }
  0x4a   : > { %326 = sbr.rel (%p1792_p4) target bundleno = 709 (0x2c5), region = 44  ;;  %s328_s18 = sand.u32 (!%p1792_p4), 1, %s1643_s28  }
  0x4b   : > { %1227 = dma.hbm_to_vmem [thread:$0]  (!%p1225_p2), %s313_s5, 2048, %s315_s0, %s1863_s16, %s2188_s1, %s2188_s1, %s2187_s3  }
  0x4c   : > { %s1034_s8 = sshll.u32 (!%p1792_p4), %s328_s18, 7  ;;  %s329_s30 = scalar_lea.sflag (!%p1792_p4), [#allocation4], %s328_s18 }
  0x4d   : > { %s1951_s7 = scalar_lea.vmem (!%p1792_p4), [#allocation3], %s1034_s8 }
  0x4f   : > { %1594 = dma.done.wait (%p1890_p13), %s329_s30, 2048  }
  0x50   : > { %1596 = vsyncadd (%p1890_p13), %s329_s30, 4294965248  ;;  %s2196_s12 = sld [smem:[#allocation18_spill]]  ;;  %s338_s17 = sand.u32 1, %s1783_s11  }
  0x51   : > { %s339_s15 = scalar_lea.sflag [#allocation7], %s338_s17 }
  0x56   : > { %s340_s0 = sand.u32 1, %s2196_s12  }
  0x57   : > { %s1035_s1 = sshll.u32 %s340_s0, 7 }
  0x58   : > { %s1959_s16 = scalar_lea.vmem [#allocation6], %s1035_s1 }
  0x59   : > { %1598 = dma.done.wait (%p1840_p3), %s339_s15, 2048  }
  0x5a   : > { %1600 = vsyncadd (%p1840_p3), %s339_s15, 4294965248  ;;  %s350_s3 = sand.u32 1, %s1619_s22  }
  0x5b   : > { %s1036_s5 = sshll.u32 %s350_s3, 7 }
  0x5c   : > { %s1968_s25 = scalar_lea.vmem [#allocation8], %s1036_s5 }
  0x5d   : > { %1602 = dma.done.wait (%p1927_p6), %s339_s15, 2048  }
  0x5e   : > { %1604 = vsyncadd (%p1927_p6), %s339_s15, 4294965248 }
  0x5f   : > { %1606 = dma.done.wait (%p61_p1), [#allocation10], 4096  }
  0x60   : > { %1608 = vsyncadd (%p61_p1), [#allocation10], 4294963200  ;;  %s1978_s20 = scalar_lea.vmem [#allocation12], %s1036_s5  ;;  %s2197_s14 = sld [smem:[#allocation19_spill]] }
  0x66   : > { %p1040_p4 = scmp.ne.s32.totalorder %s2197_s14, 0 }
  0x67   : > { %s2198_s13 = sld [smem:[#allocation30_spill]] (!%p1040_p4) }
  0x68   : > { %409 = sbr.rel (%p1040_p4) target bundleno = 301 (0x12d), region = 68 }
  0x6d   : > { %v457_v0 = vld [vmem:[#allocation11 + $0x78] sm:$0xff]  ;;  %v456_v1 = vld [vmem:[#allocation11 + $0x70] sm:$0xff]  ;;  %v1674_v2 = vmov 0.0   ;;  %v455_v3 = vld [vmem:[#allocation11 + $0x68] sm:$0xff] }
  0x6e   : > { %1052 = vmatpush.msra.mxu2 %v457_v0  ;;  %1053 = vmatpush.msra.mxu3 %v457_v0  ;;  %410 = vst [vmem:[#allocation2 + $0x30] sm:$0xff] %v1674_v2  ;;  %v454_v4 = vld [vmem:[#allocation11 + $0x60] sm:$0xff]  ;;  %v453_v5 = vld [vmem:[#allocation11 + $0x58] sm:$0xff]  ;;  %v452_v6 = vld [vmem:[#allocation11 + $0x50] sm:$0xff] }
  0x6f   : > { %411 = vst [vmem:[#allocation2] sm:$0xff] %v1674_v2  ;;  %462 = vmatpush.msra.mxu0 %v457_v0  ;;  %1051 = vmatpush.msra.mxu1 %v457_v0  ;;  %v451_v7 = vld [vmem:[#allocation11 + $0x48] sm:$0xff]  ;;  %v450_v8 = vld [vmem:[#allocation11 + $0x40] sm:$0xff]  ;;  %v449_v9 = vld [vmem:[#allocation11 + $0x38] sm:$0xff] }
  0x70   : > { %1055 = vmatpush.msra.mxu2 %v456_v1  ;;  %1056 = vmatpush.msra.mxu3 %v456_v1  ;;  %412 = vst [vmem:[#allocation2 + $0x58] sm:$0xff] %v1674_v2  ;;  %v448_v10 = vld [vmem:[#allocation11 + $0x30] sm:$0xff]  ;;  %v447_v11 = vld [vmem:[#allocation11 + $0x28] sm:$0xff]  ;;  %v446_v12 = vld [vmem:[#allocation11 + $0x20] sm:$0xff] }
  0x71   : > { %413 = vst [vmem:[#allocation2 + $0x18] sm:$0xff] %v1674_v2  ;;  %463 = vmatpush.msra.mxu0 %v456_v1  ;;  %1054 = vmatpush.msra.mxu1 %v456_v1  ;;  %v445_v13 = vld [vmem:[#allocation11 + $0x18] sm:$0xff]  ;;  %v444_v14 = vld [vmem:[#allocation11 + $0x10] sm:$0xff]  ;;  %v443_v15 = vld [vmem:[#allocation11 + $0x8] sm:$0xff] }
  0x72   : > { %1058 = vmatpush.msra.mxu2 %v455_v3  ;;  %1059 = vmatpush.msra.mxu3 %v455_v3  ;;  %414 = vst [vmem:[#allocation2 + $0x50] sm:$0xff] %v1674_v2  ;;  %v442_v16 = vld [vmem:[#allocation11] sm:$0xff]  ;;  %v435_v21 = vld [vmem:[%s1968_s25 + $0x48] sm:$0xff]  ;;  %v436_v25 = vld [vmem:[%s1968_s25 + $0x50] sm:$0xff] }
  0x73   : > { %415 = vst [vmem:[#allocation2 + $0x68] sm:$0xff] %v1674_v2  ;;  %464 = vmatpush.msra.mxu0 %v455_v3  ;;  %1057 = vmatpush.msra.mxu1 %v455_v3  ;;  %v434_v17 = vld [vmem:[%s1968_s25 + $0x40] sm:$0xff]  ;;  %v439_v22 = vld [vmem:[%s1968_s25 + $0x68] sm:$0xff]  ;;  %v440_v26 = vld [vmem:[%s1968_s25 + $0x70] sm:$0xff] }
  0x74   : > { %416 = vst [vmem:[#allocation2 + $0x8] sm:$0xff] %v1674_v2  ;;  %1061 = vmatpush.msra.mxu2 %v454_v4  ;;  %1062 = vmatpush.msra.mxu3 %v454_v4  ;;  %v438_v18 = vld [vmem:[%s1968_s25 + $0x60] sm:$0xff]  ;;  %v427_v23 = vld [vmem:[%s1968_s25 + $0x8] sm:$0xff]  ;;  %v428_v27 = vld [vmem:[%s1968_s25 + $0x10] sm:$0xff] }
  0x75   : > { %417 = vst [vmem:[#allocation2 + $0x48] sm:$0xff] %v1674_v2  ;;  %465 = vmatpush.msra.mxu0 %v454_v4  ;;  %1060 = vmatpush.msra.mxu1 %v454_v4  ;;  %v426_v19 = vld [vmem:[%s1968_s25] sm:$0xff]  ;;  %v431_v24 = vld [vmem:[%s1968_s25 + $0x28] sm:$0xff]  ;;  %v432_v28 = vld [vmem:[%s1968_s25 + $0x30] sm:$0xff] }
  0x76   : > { %418 = vst [vmem:[#allocation2 + $0x40] sm:$0xff] %v1674_v2  ;;  %1064 = vmatpush.msra.mxu2 %v453_v5  ;;  %1065 = vmatpush.msra.mxu3 %v453_v5  ;;  %v430_v20 = vld [vmem:[%s1968_s25 + $0x20] sm:$0xff]  ;;  %v437_v29 = vld [vmem:[%s1968_s25 + $0x58] sm:$0xff] }
  0x77   : > { %419 = vst [vmem:[#allocation2 + $0x20] sm:$0xff] %v1674_v2  ;;  %466 = vmatpush.msra.mxu0 %v453_v5  ;;  %1063 = vmatpush.msra.mxu1 %v453_v5  ;;  %v441_v30 = vld [vmem:[%s1968_s25 + $0x78] sm:$0xff]  ;;  %v1358_v33 = vld [vmem:[%s2198_s13] ss:$0 sm:$0xff] }
  0x78   : > { %420 = vst [vmem:[#allocation2 + $0x10] sm:$0xff] %v1674_v2  ;;  %1067 = vmatpush.msra.mxu2 %v452_v6  ;;  %1068 = vmatpush.msra.mxu3 %v452_v6  ;;  %v429_v31 = vld [vmem:[%s1968_s25 + $0x18] sm:$0xff] }
  0x79   : > { %421 = vst [vmem:[#allocation2 + $0x38] sm:$0xff] %v1674_v2  ;;  %467 = vmatpush.msra.mxu0 %v452_v6  ;;  %1066 = vmatpush.msra.mxu1 %v452_v6  ;;  %v433_v32 = vld [vmem:[%s1968_s25 + $0x38] sm:$0xff] }
  0x7a   : > { %422 = vst [vmem:[#allocation2 + $0x60] sm:$0xff] %v1674_v2  ;;  %1070 = vmatpush.msra.mxu2 %v451_v7  ;;  %1071 = vmatpush.msra.mxu3 %v451_v7 }
  0x7b   : > { %423 = vst [vmem:[#allocation2 + $0x70] sm:$0xff] %v1674_v2  ;;  %468 = vmatpush.msra.mxu0 %v451_v7  ;;  %1069 = vmatpush.msra.mxu1 %v451_v7 }
  0x7c   : > { %424 = vst [vmem:[#allocation2 + $0x78] sm:$0xff] %v1674_v2  ;;  %1073 = vmatpush.msra.mxu2 %v450_v8  ;;  %1074 = vmatpush.msra.mxu3 %v450_v8 }
  0x7d   : > { %425 = vst [vmem:[#allocation2 + $0x28] sm:$0xff] %v1674_v2  ;;  %469 = vmatpush.msra.mxu0 %v450_v8  ;;  %1072 = vmatpush.msra.mxu1 %v450_v8 }
  0x7e   : > { %1076 = vmatpush.msra.mxu2 %v449_v9  ;;  %1077 = vmatpush.msra.mxu3 %v449_v9 }
  0x7f   : > { %470 = vmatpush.msra.mxu0 %v449_v9  ;;  %1075 = vmatpush.msra.mxu1 %v449_v9 }
  0x80   : > { %1079 = vmatpush.msra.mxu2 %v448_v10  ;;  %1080 = vmatpush.msra.mxu3 %v448_v10 }
  0x81   : > { %471 = vmatpush.msra.mxu0 %v448_v10  ;;  %1078 = vmatpush.msra.mxu1 %v448_v10 }
  0x82   : > { %1082 = vmatpush.msra.mxu2 %v447_v11  ;;  %1083 = vmatpush.msra.mxu3 %v447_v11 }
  0x83   : > { %472 = vmatpush.msra.mxu0 %v447_v11  ;;  %1081 = vmatpush.msra.mxu1 %v447_v11 }
  0x84   : > { %1085 = vmatpush.msra.mxu2 %v446_v12  ;;  %1086 = vmatpush.msra.mxu3 %v446_v12 }
  0x85   : > { %473 = vmatpush.msra.mxu0 %v446_v12  ;;  %1084 = vmatpush.msra.mxu1 %v446_v12 }
  0x86   : > { %1088 = vmatpush.msra.mxu2 %v445_v13  ;;  %1089 = vmatpush.msra.mxu3 %v445_v13 }
  0x87   : > { %474 = vmatpush.msra.mxu0 %v445_v13  ;;  %1087 = vmatpush.msra.mxu1 %v445_v13 }
  0x88   : > { %1091 = vmatpush.msra.mxu2 %v444_v14  ;;  %1092 = vmatpush.msra.mxu3 %v444_v14 }
  0x89   : > { %475 = vmatpush.msra.mxu0 %v444_v14  ;;  %1090 = vmatpush.msra.mxu1 %v444_v14 }
  0x8a   : > { %1094 = vmatpush.msra.mxu2 %v443_v15  ;;  %1095 = vmatpush.msra.mxu3 %v443_v15 }
  0x8b   : > { %476 = vmatpush.msra.mxu0 %v443_v15  ;;  %1093 = vmatpush.msra.mxu1 %v443_v15 }
  0x8c   : > { %1097 = vmatpush.msra.mxu2 %v442_v16  ;;  %1098 = vmatpush.msra.mxu3 %v442_v16 }
  0x8d   : > { %502 = vmatmul.f32.vlgmr.msra.gmra.mxu2 %v434_v17  ;;  %514 = vmatmul.f32.vlgmr.msra.gmra.mxu3 %v438_v18 }
  0x8e   : > { %477 = vmatpush.msra.mxu0 %v442_v16  ;;  %1096 = vmatpush.msra.mxu1 %v442_v16 }
  0x8f   : > { %478 = vmatmul.f32.vlgmr.msra.gmra.mxu0 %v426_v19  ;;  %490 = vmatmul.f32.vlgmr.msra.gmra.mxu1 %v430_v20 }
  0x95   : > { %505 = vmatmul.f32.gmra.mxu2 %v435_v21  ;;  %517 = vmatmul.f32.gmra.mxu3 %v439_v22 }
  0x97   : > { %481 = vmatmul.f32.gmra.mxu0 %v427_v23  ;;  %493 = vmatmul.f32.gmra.mxu1 %v431_v24 }
  0x9d   : > { %508 = vmatmul.f32.gmra.mxu2 %v436_v25  ;;  %520 = vmatmul.f32.gmra.mxu3 %v440_v26 }
  0x9f   : > { %484 = vmatmul.f32.gmra.mxu0 %v428_v27  ;;  %496 = vmatmul.f32.gmra.mxu1 %v432_v28 }
  0xa5   : > { %511 = vmatmul.f32.gmra.mxu2 %v437_v29  ;;  %523 = vmatmul.f32.gmra.mxu3 %v441_v30 }
  0xa7   : > { %487 = vmatmul.f32.gmra.mxu0 %v429_v31  ;;  %499 = vmatmul.f32.gmra.mxu1 %v433_v32 }
 0x10c   : > { %v479_v34 = vpop.f32.mrf.mxu0  ;;  %v491_v35 = vpop.f32.mrf.mxu1 }
 0x10d   : > { %v480_v36 = vadd.f32 %v1358_v33, %v479_v34  ;;  %v492_v37 = vadd.f32 %v1358_v33, %v491_v35 }
 0x10f   : > { %527 = vst [vmem:[%s1978_s20] sm:$0xff] %v480_v36 }
 0x110   : > { %531 = vst [vmem:[%s1978_s20 + $0x20] sm:$0xff] %v492_v37  ;;  %v503_v38 = vpop.f32.mrf.mxu2  ;;  %v515_v39 = vpop.f32.mrf.mxu3 }
 0x111   : > { %v504_v40 = vadd.f32 %v1358_v33, %v503_v38  ;;  %v516_v41 = vadd.f32 %v1358_v33, %v515_v39 }
 0x113   : > { %535 = vst [vmem:[%s1978_s20 + $0x40] sm:$0xff] %v504_v40 }
 0x114   : > { %539 = vst [vmem:[%s1978_s20 + $0x60] sm:$0xff] %v516_v41  ;;  %v482_v42 = vpop.f32.mrf.mxu0  ;;  %v494_v43 = vpop.f32.mrf.mxu1 }
 0x115   : > { %v483_v44 = vadd.f32 %v1358_v33, %v482_v42  ;;  %v495_v45 = vadd.f32 %v1358_v33, %v494_v43 }
 0x117   : > { %528 = vst [vmem:[%s1978_s20 + $0x8] sm:$0xff] %v483_v44 }
 0x118   : > { %532 = vst [vmem:[%s1978_s20 + $0x28] sm:$0xff] %v495_v45  ;;  %v506_v46 = vpop.f32.mrf.mxu2  ;;  %v518_v47 = vpop.f32.mrf.mxu3 }
 0x119   : > { %v507_v48 = vadd.f32 %v1358_v33, %v506_v46  ;;  %v519_v49 = vadd.f32 %v1358_v33, %v518_v47 }
 0x11b   : > { %536 = vst [vmem:[%s1978_s20 + $0x48] sm:$0xff] %v507_v48 }
 0x11c   : > { %540 = vst [vmem:[%s1978_s20 + $0x68] sm:$0xff] %v519_v49  ;;  %v485_v50 = vpop.f32.mrf.mxu0  ;;  %v497_v51 = vpop.f32.mrf.mxu1 }
 0x11d   : > { %v486_v52 = vadd.f32 %v1358_v33, %v485_v50  ;;  %v498_v53 = vadd.f32 %v1358_v33, %v497_v51 }
 0x11f   : > { %529 = vst [vmem:[%s1978_s20 + $0x10] sm:$0xff] %v486_v52 }
 0x120   : > { %533 = vst [vmem:[%s1978_s20 + $0x30] sm:$0xff] %v498_v53  ;;  %v509_v54 = vpop.f32.mrf.mxu2  ;;  %v521_v55 = vpop.f32.mrf.mxu3 }
 0x121   : > { %v510_v56 = vadd.f32 %v1358_v33, %v509_v54  ;;  %v522_v57 = vadd.f32 %v1358_v33, %v521_v55 }
 0x123   : > { %537 = vst [vmem:[%s1978_s20 + $0x50] sm:$0xff] %v510_v56 }
 0x124   : > { %541 = vst [vmem:[%s1978_s20 + $0x70] sm:$0xff] %v522_v57  ;;  %v488_v58 = vpop.f32.mrf.mxu0  ;;  %v500_v59 = vpop.f32.mrf.mxu1 }
 0x125   : > { %v489_v60 = vadd.f32 %v1358_v33, %v488_v58  ;;  %v501_v61 = vadd.f32 %v1358_v33, %v500_v59 }
 0x127   : > { %530 = vst [vmem:[%s1978_s20 + $0x18] sm:$0xff] %v489_v60 }
 0x128   : > { %534 = vst [vmem:[%s1978_s20 + $0x38] sm:$0xff] %v501_v61  ;;  %v512_v62 = vpop.f32.mrf.mxu2  ;;  %v524_v63 = vpop.f32.mrf.mxu3 }
 0x129   : > { %v513_v0 = vadd.f32 %v1358_v33, %v512_v62  ;;  %v525_v1 = vadd.f32 %v1358_v33, %v524_v63 }
 0x12b   : > { %538 = vst [vmem:[%s1978_s20 + $0x58] sm:$0xff] %v513_v0 }
 0x12c   : > { %542 = vst [vmem:[%s1978_s20 + $0x78] sm:$0xff] %v525_v1 }
 0x12d PF: > { %v590_v2 = vld [vmem:[%s1959_s16 + $0x78] sm:$0xff]  ;;  %v589_v3 = vld [vmem:[%s1959_s16 + $0x70] sm:$0xff]  ;;  %v588_v4 = vld [vmem:[%s1959_s16 + $0x68] sm:$0xff]  ;;  %s2199_s24 = sld [smem:[#allocation19_spill]] }
 0x12e   : > { %1100 = vmatpush.msra.mxu2 %v590_v2  ;;  %1101 = vmatpush.msra.mxu3 %v590_v2  ;;  %v587_v5 = vld [vmem:[%s1959_s16 + $0x60] sm:$0xff]  ;;  %v586_v6 = vld [vmem:[%s1959_s16 + $0x58] sm:$0xff]  ;;  %v585_v7 = vld [vmem:[%s1959_s16 + $0x50] sm:$0xff] }
 0x12f   : > { %591 = vmatpush.msra.mxu0 %v590_v2  ;;  %1099 = vmatpush.msra.mxu1 %v590_v2  ;;  %v584_v8 = vld [vmem:[%s1959_s16 + $0x48] sm:$0xff]  ;;  %v583_v9 = vld [vmem:[%s1959_s16 + $0x40] sm:$0xff]  ;;  %v582_v10 = vld [vmem:[%s1959_s16 + $0x38] sm:$0xff] }
 0x130   : > { %1103 = vmatpush.msra.mxu2 %v589_v3  ;;  %1104 = vmatpush.msra.mxu3 %v589_v3  ;;  %v581_v11 = vld [vmem:[%s1959_s16 + $0x30] sm:$0xff]  ;;  %v580_v12 = vld [vmem:[%s1959_s16 + $0x28] sm:$0xff]  ;;  %v579_v13 = vld [vmem:[%s1959_s16 + $0x20] sm:$0xff] }
 0x131   : > { %592 = vmatpush.msra.mxu0 %v589_v3  ;;  %1102 = vmatpush.msra.mxu1 %v589_v3  ;;  %v578_v14 = vld [vmem:[%s1959_s16 + $0x18] sm:$0xff]  ;;  %v577_v15 = vld [vmem:[%s1959_s16 + $0x10] sm:$0xff]  ;;  %v576_v16 = vld [vmem:[%s1959_s16 + $0x8] sm:$0xff] }
 0x132   : > { %1106 = vmatpush.msra.mxu2 %v588_v4  ;;  %1107 = vmatpush.msra.mxu3 %v588_v4  ;;  %v575_v17 = vld [vmem:[%s1959_s16] sm:$0xff]  ;;  %v568_v22 = vld [vmem:[%s1951_s7 + $0x48] sm:$0xff]  ;;  %v569_v26 = vld [vmem:[%s1951_s7 + $0x50] sm:$0xff] }
 0x133   : > { %593 = vmatpush.msra.mxu0 %v588_v4  ;;  %1105 = vmatpush.msra.mxu1 %v588_v4  ;;  %v567_v18 = vld [vmem:[%s1951_s7 + $0x40] sm:$0xff]  ;;  %v572_v23 = vld [vmem:[%s1951_s7 + $0x68] sm:$0xff]  ;;  %v573_v27 = vld [vmem:[%s1951_s7 + $0x70] sm:$0xff]  ;;  %p1041_p1 = scmp.ne.s32.totalorder %s2199_s24, 1 }
 0x134   : > { %1109 = vmatpush.msra.mxu2 %v587_v5  ;;  %1110 = vmatpush.msra.mxu3 %v587_v5  ;;  %v571_v19 = vld [vmem:[%s1951_s7 + $0x60] sm:$0xff]  ;;  %v560_v24 = vld [vmem:[%s1951_s7 + $0x8] sm:$0xff]  ;;  %v561_v28 = vld [vmem:[%s1951_s7 + $0x10] sm:$0xff] }
 0x135   : > { %594 = vmatpush.msra.mxu0 %v587_v5  ;;  %1108 = vmatpush.msra.mxu1 %v587_v5  ;;  %v559_v20 = vld [vmem:[%s1951_s7] sm:$0xff]  ;;  %v564_v25 = vld [vmem:[%s1951_s7 + $0x28] sm:$0xff]  ;;  %v565_v29 = vld [vmem:[%s1951_s7 + $0x30] sm:$0xff] }
 0x136   : > { %1112 = vmatpush.msra.mxu2 %v586_v6  ;;  %1113 = vmatpush.msra.mxu3 %v586_v6  ;;  %v563_v21 = vld [vmem:[%s1951_s7 + $0x20] sm:$0xff]  ;;  %v570_v30 = vld [vmem:[%s1951_s7 + $0x58] sm:$0xff]  ;;  %v543_v34 = vld [vmem:[#allocation2 + $0x30] sm:$0xff] }
 0x137   : > { %595 = vmatpush.msra.mxu0 %v586_v6  ;;  %1111 = vmatpush.msra.mxu1 %v586_v6  ;;  %v574_v31 = vld [vmem:[%s1951_s7 + $0x78] sm:$0xff]  ;;  %v547_v35 = vld [vmem:[#allocation2 + $0x50] sm:$0xff]  ;;  %v551_v40 = vld [vmem:[#allocation2 + $0x40] sm:$0xff] }
 0x138   : > { %1115 = vmatpush.msra.mxu2 %v585_v7  ;;  %1116 = vmatpush.msra.mxu3 %v585_v7  ;;  %v562_v32 = vld [vmem:[%s1951_s7 + $0x18] sm:$0xff]  ;;  %v555_v41 = vld [vmem:[#allocation2 + $0x60] sm:$0xff]  ;;  %v548_v47 = vld [vmem:[#allocation2 + $0x68] sm:$0xff] }
 0x139   : > { %596 = vmatpush.msra.mxu0 %v585_v7  ;;  %1114 = vmatpush.msra.mxu1 %v585_v7  ;;  %v566_v33 = vld [vmem:[%s1951_s7 + $0x38] sm:$0xff]  ;;  %v544_v46 = vld [vmem:[#allocation2] sm:$0xff]  ;;  %v556_v53 = vld [vmem:[#allocation2 + $0x70] sm:$0xff] }
 0x13a   : > { %1118 = vmatpush.msra.mxu2 %v584_v8  ;;  %1119 = vmatpush.msra.mxu3 %v584_v8  ;;  %v552_v52 = vld [vmem:[#allocation2 + $0x20] sm:$0xff]  ;;  %v545_v58 = vld [vmem:[#allocation2 + $0x58] sm:$0xff]  ;;  %v549_v59 = vld [vmem:[#allocation2 + $0x8] sm:$0xff] }
 0x13b   : > { %597 = vmatpush.msra.mxu0 %v584_v8  ;;  %1117 = vmatpush.msra.mxu1 %v584_v8  ;;  %v553_v0 = vld [vmem:[#allocation2 + $0x10] sm:$0xff]  ;;  %v557_v1 = vld [vmem:[#allocation2 + $0x78] sm:$0xff]  ;;  %v550_v7 = vld [vmem:[#allocation2 + $0x48] sm:$0xff] }
 0x13c   : > { %1121 = vmatpush.msra.mxu2 %v583_v9  ;;  %1122 = vmatpush.msra.mxu3 %v583_v9  ;;  %v546_v6 = vld [vmem:[#allocation2 + $0x18] sm:$0xff] }
 0x13d   : > { %598 = vmatpush.msra.mxu0 %v583_v9  ;;  %1120 = vmatpush.msra.mxu1 %v583_v9 }
 0x13e   : > { %1124 = vmatpush.msra.mxu2 %v582_v10  ;;  %1125 = vmatpush.msra.mxu3 %v582_v10 }
 0x13f   : > { %599 = vmatpush.msra.mxu0 %v582_v10  ;;  %1123 = vmatpush.msra.mxu1 %v582_v10 }
 0x140   : > { %1127 = vmatpush.msra.mxu2 %v581_v11  ;;  %1128 = vmatpush.msra.mxu3 %v581_v11 }
 0x141   : > { %600 = vmatpush.msra.mxu0 %v581_v11  ;;  %1126 = vmatpush.msra.mxu1 %v581_v11 }
 0x142   : > { %1130 = vmatpush.msra.mxu2 %v580_v12  ;;  %1131 = vmatpush.msra.mxu3 %v580_v12 }
 0x143   : > { %601 = vmatpush.msra.mxu0 %v580_v12  ;;  %1129 = vmatpush.msra.mxu1 %v580_v12  ;;  %v554_v12 = vld [vmem:[#allocation2 + $0x38] sm:$0xff] }
 0x144   : > { %1133 = vmatpush.msra.mxu2 %v579_v13  ;;  %1134 = vmatpush.msra.mxu3 %v579_v13 }
 0x145   : > { %602 = vmatpush.msra.mxu0 %v579_v13  ;;  %1132 = vmatpush.msra.mxu1 %v579_v13  ;;  %v558_v13 = vld [vmem:[#allocation2 + $0x28] sm:$0xff] }
 0x146   : > { %1136 = vmatpush.msra.mxu2 %v578_v14  ;;  %1137 = vmatpush.msra.mxu3 %v578_v14 }
 0x147   : > { %603 = vmatpush.msra.mxu0 %v578_v14  ;;  %1135 = vmatpush.msra.mxu1 %v578_v14 }
 0x148   : > { %1139 = vmatpush.msra.mxu2 %v577_v15  ;;  %1140 = vmatpush.msra.mxu3 %v577_v15 }
 0x149   : > { %604 = vmatpush.msra.mxu0 %v577_v15  ;;  %1138 = vmatpush.msra.mxu1 %v577_v15 }
 0x14a   : > { %1142 = vmatpush.msra.mxu2 %v576_v16  ;;  %1143 = vmatpush.msra.mxu3 %v576_v16 }
 0x14b   : > { %605 = vmatpush.msra.mxu0 %v576_v16  ;;  %1141 = vmatpush.msra.mxu1 %v576_v16 }
 0x14c   : > { %1145 = vmatpush.msra.mxu2 %v575_v17  ;;  %1146 = vmatpush.msra.mxu3 %v575_v17 }
 0x14d   : > { %631 = vmatmul.f32.vlgmr.msra.gmra.mxu2 %v567_v18  ;;  %643 = vmatmul.f32.vlgmr.msra.gmra.mxu3 %v571_v19 }
 0x14e   : > { %606 = vmatpush.msra.mxu0 %v575_v17  ;;  %1144 = vmatpush.msra.mxu1 %v575_v17 }
 0x14f   : > { %607 = vmatmul.f32.vlgmr.msra.gmra.mxu0 %v559_v20  ;;  %619 = vmatmul.f32.vlgmr.msra.gmra.mxu1 %v563_v21 }
 0x155   : > { %634 = vmatmul.f32.gmra.mxu2 %v568_v22  ;;  %646 = vmatmul.f32.gmra.mxu3 %v572_v23 }
 0x157   : > { %610 = vmatmul.f32.gmra.mxu0 %v560_v24  ;;  %622 = vmatmul.f32.gmra.mxu1 %v564_v25 }
 0x15d   : > { %637 = vmatmul.f32.gmra.mxu2 %v569_v26  ;;  %649 = vmatmul.f32.gmra.mxu3 %v573_v27 }
 0x15f   : > { %613 = vmatmul.f32.gmra.mxu0 %v561_v28  ;;  %625 = vmatmul.f32.gmra.mxu1 %v565_v29 }
 0x165   : > { %640 = vmatmul.f32.gmra.mxu2 %v570_v30  ;;  %652 = vmatmul.f32.gmra.mxu3 %v574_v31 }
 0x167   : > { %616 = vmatmul.f32.gmra.mxu0 %v562_v32  ;;  %628 = vmatmul.f32.gmra.mxu1 %v566_v33 }
 0x1cc   : > { %v608_v36 = vpop.f32.mrf.mxu0  ;;  %v620_v37 = vpop.f32.mrf.mxu1 }
 0x1cd   : > { %v656_v38 = vadd.f32 %v608_v36, %v543_v34  ;;  %v660_v39 = vadd.f32 %v620_v37, %v547_v35 }
 0x1cf   : > { %672 = vst [vmem:[#allocation2 + $0x30] sm:$0xff] %v656_v38 }
 0x1d0   : > { %676 = vst [vmem:[#allocation2 + $0x50] sm:$0xff] %v660_v39  ;;  %v632_v42 = vpop.f32.mrf.mxu2  ;;  %v644_v43 = vpop.f32.mrf.mxu3 }
 0x1d1   : > { %v664_v44 = vadd.f32 %v632_v42, %v551_v40  ;;  %v668_v45 = vadd.f32 %v644_v43, %v555_v41 }
 0x1d3   : > { %680 = vst [vmem:[#allocation2 + $0x40] sm:$0xff] %v664_v44 }
 0x1d4   : > { %684 = vst [vmem:[#allocation2 + $0x60] sm:$0xff] %v668_v45  ;;  %v611_v48 = vpop.f32.mrf.mxu0  ;;  %v623_v49 = vpop.f32.mrf.mxu1 }
 0x1d5   : > { %v657_v50 = vadd.f32 %v611_v48, %v544_v46  ;;  %v661_v51 = vadd.f32 %v623_v49, %v548_v47 }
 0x1d7   : > { %673 = vst [vmem:[#allocation2] sm:$0xff] %v657_v50 }
 0x1d8   : > { %677 = vst [vmem:[#allocation2 + $0x68] sm:$0xff] %v661_v51  ;;  %v635_v54 = vpop.f32.mrf.mxu2  ;;  %v647_v55 = vpop.f32.mrf.mxu3 }
 0x1d9   : > { %v665_v56 = vadd.f32 %v635_v54, %v552_v52  ;;  %v669_v57 = vadd.f32 %v647_v55, %v556_v53 }
 0x1db   : > { %681 = vst [vmem:[#allocation2 + $0x20] sm:$0xff] %v665_v56 }
 0x1dc   : > { %685 = vst [vmem:[#allocation2 + $0x70] sm:$0xff] %v669_v57  ;;  %v614_v60 = vpop.f32.mrf.mxu0  ;;  %v626_v61 = vpop.f32.mrf.mxu1 }
 0x1dd   : > { %v658_v62 = vadd.f32 %v614_v60, %v545_v58  ;;  %v662_v63 = vadd.f32 %v626_v61, %v549_v59 }
 0x1df   : > { %674 = vst [vmem:[#allocation2 + $0x58] sm:$0xff] %v658_v62 }
 0x1e0   : > { %678 = vst [vmem:[#allocation2 + $0x8] sm:$0xff] %v662_v63  ;;  %v638_v2 = vpop.f32.mrf.mxu2  ;;  %v650_v3 = vpop.f32.mrf.mxu3 }
 0x1e1   : > { %v666_v4 = vadd.f32 %v638_v2, %v553_v0  ;;  %v670_v5 = vadd.f32 %v650_v3, %v557_v1 }
 0x1e3   : > { %682 = vst [vmem:[#allocation2 + $0x10] sm:$0xff] %v666_v4 }
 0x1e4   : > { %686 = vst [vmem:[#allocation2 + $0x78] sm:$0xff] %v670_v5  ;;  %v617_v8 = vpop.f32.mrf.mxu0  ;;  %v629_v9 = vpop.f32.mrf.mxu1 }
 0x1e5   : > { %v659_v10 = vadd.f32 %v617_v8, %v546_v6  ;;  %v663_v11 = vadd.f32 %v629_v9, %v550_v7 }
 0x1e7   : > { %675 = vst [vmem:[#allocation2 + $0x18] sm:$0xff] %v659_v10 }
 0x1e8   : > { %679 = vst [vmem:[#allocation2 + $0x48] sm:$0xff] %v663_v11  ;;  %v641_v14 = vpop.f32.mrf.mxu2  ;;  %v653_v15 = vpop.f32.mrf.mxu3  ;;  %691 = sbr.rel (%p1041_p1) target bundleno = 687 (0x2af), region = 72 }
 0x1e9   : > { %v667_v16 = vadd.f32 %v641_v14, %v554_v12  ;;  %v671_v17 = vadd.f32 %v653_v15, %v558_v13 }
 0x1eb   : > { %683 = vst [vmem:[#allocation2 + $0x38] sm:$0xff] %v667_v16 }
 0x1ec   : > { %687 = vst [vmem:[#allocation2 + $0x28] sm:$0xff] %v671_v17 }
 0x1ed   : > { %v739_v18 = vld [vmem:[#allocation9 + $0x78] sm:$0xff]  ;;  %v738_v19 = vld [vmem:[#allocation9 + $0x70] sm:$0xff]  ;;  %v737_v20 = vld [vmem:[#allocation9 + $0x68] sm:$0xff] }
 0x1ee   : > { %1148 = vmatpush.msra.mxu2 %v739_v18  ;;  %1149 = vmatpush.msra.mxu3 %v739_v18  ;;  %v736_v21 = vld [vmem:[#allocation9 + $0x60] sm:$0xff]  ;;  %v735_v22 = vld [vmem:[#allocation9 + $0x58] sm:$0xff]  ;;  %v734_v23 = vld [vmem:[#allocation9 + $0x50] sm:$0xff] }
 0x1ef   : > { %740 = vmatpush.msra.mxu0 %v739_v18  ;;  %1147 = vmatpush.msra.mxu1 %v739_v18  ;;  %v733_v24 = vld [vmem:[#allocation9 + $0x48] sm:$0xff]  ;;  %v732_v25 = vld [vmem:[#allocation9 + $0x40] sm:$0xff]  ;;  %v731_v26 = vld [vmem:[#allocation9 + $0x38] sm:$0xff] }
 0x1f0   : > { %1151 = vmatpush.msra.mxu2 %v738_v19  ;;  %1152 = vmatpush.msra.mxu3 %v738_v19  ;;  %v730_v27 = vld [vmem:[#allocation9 + $0x30] sm:$0xff]  ;;  %v729_v28 = vld [vmem:[#allocation9 + $0x28] sm:$0xff]  ;;  %v728_v29 = vld [vmem:[#allocation9 + $0x20] sm:$0xff] }
 0x1f1   : > { %741 = vmatpush.msra.mxu0 %v738_v19  ;;  %1150 = vmatpush.msra.mxu1 %v738_v19  ;;  %v727_v30 = vld [vmem:[#allocation9 + $0x18] sm:$0xff]  ;;  %v726_v31 = vld [vmem:[#allocation9 + $0x10] sm:$0xff]  ;;  %v725_v32 = vld [vmem:[#allocation9 + $0x8] sm:$0xff] }
 0x1f2   : > { %1154 = vmatpush.msra.mxu2 %v737_v20  ;;  %1155 = vmatpush.msra.mxu3 %v737_v20  ;;  %v724_v33 = vld [vmem:[#allocation9] sm:$0xff]  ;;  %v708_v36 = vld [vmem:[#allocation2 + $0x30] sm:$0xff]  ;;  %v713_v41 = vld [vmem:[#allocation2 + $0x68] sm:$0xff] }
 0x1f3   : > { %742 = vmatpush.msra.mxu0 %v737_v20  ;;  %1153 = vmatpush.msra.mxu1 %v737_v20  ;;  %v716_v34 = vld [vmem:[#allocation2 + $0x40] sm:$0xff]  ;;  %v712_v37 = vld [vmem:[#allocation2 + $0x50] sm:$0xff]  ;;  %v722_v43 = vld [vmem:[#allocation2 + $0x78] sm:$0xff] }
 0x1f4   : > { %1157 = vmatpush.msra.mxu2 %v736_v21  ;;  %1158 = vmatpush.msra.mxu3 %v736_v21  ;;  %v720_v35 = vld [vmem:[#allocation2 + $0x60] sm:$0xff]  ;;  %v721_v39 = vld [vmem:[#allocation2 + $0x70] sm:$0xff]  ;;  %v710_v44 = vld [vmem:[#allocation2 + $0x58] sm:$0xff] }
 0x1f5   : > { %743 = vmatpush.msra.mxu0 %v736_v21  ;;  %1156 = vmatpush.msra.mxu1 %v736_v21  ;;  %v717_v38 = vld [vmem:[#allocation2 + $0x20] sm:$0xff]  ;;  %v718_v42 = vld [vmem:[#allocation2 + $0x10] sm:$0xff]  ;;  %v714_v45 = vld [vmem:[#allocation2 + $0x8] sm:$0xff] }
 0x1f6   : > { %1160 = vmatpush.msra.mxu2 %v735_v22  ;;  %1161 = vmatpush.msra.mxu3 %v735_v22  ;;  %v709_v40 = vld [vmem:[#allocation2] sm:$0xff]  ;;  %v719_v46 = vld [vmem:[#allocation2 + $0x38] sm:$0xff]  ;;  %v723_v47 = vld [vmem:[#allocation2 + $0x28] sm:$0xff] }
 0x1f7   : > { %744 = vmatpush.msra.mxu0 %v735_v22  ;;  %1159 = vmatpush.msra.mxu1 %v735_v22  ;;  %v711_v48 = vld [vmem:[#allocation2 + $0x18] sm:$0xff]  ;;  %v715_v49 = vld [vmem:[#allocation2 + $0x48] sm:$0xff]  ;;  %v692_v50 = vld [vmem:[%s1978_s20] sm:$0xff] }
 0x1f8   : > { %1163 = vmatpush.msra.mxu2 %v734_v23  ;;  %1164 = vmatpush.msra.mxu3 %v734_v23  ;;  %v696_v51 = vld [vmem:[%s1978_s20 + $0x20] sm:$0xff]  ;;  %v693_v0 = vld [vmem:[%s1978_s20 + $0x8] sm:$0xff]  ;;  %v694_v16 = vld [vmem:[%s1978_s20 + $0x10] sm:$0xff] }
 0x1f9   : > { %745 = vmatpush.msra.mxu0 %v734_v23  ;;  %1162 = vmatpush.msra.mxu1 %v734_v23  ;;  %v700_v56 = vld [vmem:[%s1978_s20 + $0x40] sm:$0xff]  ;;  %v697_v1 = vld [vmem:[%s1978_s20 + $0x28] sm:$0xff]  ;;  %v698_v17 = vld [vmem:[%s1978_s20 + $0x30] sm:$0xff] }
 0x1fa   : > { %1166 = vmatpush.msra.mxu2 %v733_v24  ;;  %1167 = vmatpush.msra.mxu3 %v733_v24  ;;  %v704_v57 = vld [vmem:[%s1978_s20 + $0x60] sm:$0xff]  ;;  %v701_v8 = vld [vmem:[%s1978_s20 + $0x48] sm:$0xff] }
 0x1fb   : > { %746 = vmatpush.msra.mxu0 %v733_v24  ;;  %1165 = vmatpush.msra.mxu1 %v733_v24  ;;  %v705_v9 = vld [vmem:[%s1978_s20 + $0x68] sm:$0xff]  ;;  %v702_v24 = vld [vmem:[%s1978_s20 + $0x50] sm:$0xff] }
 0x1fc   : > { %1169 = vmatpush.msra.mxu2 %v732_v25  ;;  %1170 = vmatpush.msra.mxu3 %v732_v25 }
 0x1fd   : > { %747 = vmatpush.msra.mxu0 %v732_v25  ;;  %1168 = vmatpush.msra.mxu1 %v732_v25  ;;  %v706_v25 = vld [vmem:[%s1978_s20 + $0x70] sm:$0xff] }
 0x1fe   : > { %1172 = vmatpush.msra.mxu2 %v731_v26  ;;  %1173 = vmatpush.msra.mxu3 %v731_v26 }
 0x1ff   : > { %748 = vmatpush.msra.mxu0 %v731_v26  ;;  %1171 = vmatpush.msra.mxu1 %v731_v26 }
 0x200   : > { %1175 = vmatpush.msra.mxu2 %v730_v27  ;;  %1176 = vmatpush.msra.mxu3 %v730_v27 }
 0x201   : > { %749 = vmatpush.msra.mxu0 %v730_v27  ;;  %1174 = vmatpush.msra.mxu1 %v730_v27 }
 0x202   : > { %1178 = vmatpush.msra.mxu2 %v729_v28  ;;  %1179 = vmatpush.msra.mxu3 %v729_v28 }
 0x203   : > { %750 = vmatpush.msra.mxu0 %v729_v28  ;;  %1177 = vmatpush.msra.mxu1 %v729_v28 }
 0x204   : > { %1181 = vmatpush.msra.mxu2 %v728_v29  ;;  %1182 = vmatpush.msra.mxu3 %v728_v29 }
 0x205   : > { %751 = vmatpush.msra.mxu0 %v728_v29  ;;  %1180 = vmatpush.msra.mxu1 %v728_v29 }
 0x206   : > { %1184 = vmatpush.msra.mxu2 %v727_v30  ;;  %1185 = vmatpush.msra.mxu3 %v727_v30 }
 0x207   : > { %752 = vmatpush.msra.mxu0 %v727_v30  ;;  %1183 = vmatpush.msra.mxu1 %v727_v30 }
 0x208   : > { %1187 = vmatpush.msra.mxu2 %v726_v31  ;;  %1188 = vmatpush.msra.mxu3 %v726_v31 }
 0x209   : > { %753 = vmatpush.msra.mxu0 %v726_v31  ;;  %1186 = vmatpush.msra.mxu1 %v726_v31 }
 0x20a   : > { %1190 = vmatpush.msra.mxu2 %v725_v32  ;;  %1191 = vmatpush.msra.mxu3 %v725_v32 }
 0x20b   : > { %754 = vmatpush.msra.mxu0 %v725_v32  ;;  %1189 = vmatpush.msra.mxu1 %v725_v32  ;;  %v695_v32 = vld [vmem:[%s1978_s20 + $0x18] sm:$0xff] }
 0x20c   : > { %1193 = vmatpush.msra.mxu2 %v724_v33  ;;  %1194 = vmatpush.msra.mxu3 %v724_v33 }
 0x20d   : > { %780 = vmatmul.f32.vlgmr.msra.gmra.mxu2 %v716_v34  ;;  %792 = vmatmul.f32.vlgmr.msra.gmra.mxu3 %v720_v35 }
 0x20e   : > { %755 = vmatpush.msra.mxu0 %v724_v33  ;;  %1192 = vmatpush.msra.mxu1 %v724_v33  ;;  %v699_v33 = vld [vmem:[%s1978_s20 + $0x38] sm:$0xff] }
 0x20f   : > { %756 = vmatmul.f32.vlgmr.msra.gmra.mxu0 %v708_v36  ;;  %768 = vmatmul.f32.vlgmr.msra.gmra.mxu1 %v712_v37 }
 0x215   : > { %783 = vmatmul.f32.gmra.mxu2 %v717_v38  ;;  %795 = vmatmul.f32.gmra.mxu3 %v721_v39 }
 0x217   : > { %759 = vmatmul.f32.gmra.mxu0 %v709_v40  ;;  %771 = vmatmul.f32.gmra.mxu1 %v713_v41  ;;  %v703_v40 = vld [vmem:[%s1978_s20 + $0x58] sm:$0xff] }
 0x218   : > { %v707_v41 = vld [vmem:[%s1978_s20 + $0x78] sm:$0xff] }
 0x21d   : > { %786 = vmatmul.f32.gmra.mxu2 %v718_v42  ;;  %798 = vmatmul.f32.gmra.mxu3 %v722_v43 }
 0x21f   : > { %762 = vmatmul.f32.gmra.mxu0 %v710_v44  ;;  %774 = vmatmul.f32.gmra.mxu1 %v714_v45 }
 0x225   : > { %789 = vmatmul.f32.gmra.mxu2 %v719_v46  ;;  %801 = vmatmul.f32.gmra.mxu3 %v723_v47 }
 0x227   : > { %765 = vmatmul.f32.gmra.mxu0 %v711_v48  ;;  %777 = vmatmul.f32.gmra.mxu1 %v715_v49 }
 0x28c   : > { %v757_v52 = vpop.f32.mrf.mxu0  ;;  %v769_v53 = vpop.f32.mrf.mxu1 }
 0x28d   : > { %v805_v54 = vadd.f32 %v757_v52, %v692_v50  ;;  %v809_v55 = vadd.f32 %v769_v53, %v696_v51 }
 0x28f   : > { %v821_v58 = vmax.f32 %v805_v54, 0.0  ;;  %v825_v59 = vmax.f32 %v809_v55, 0.0 }
 0x290   : > { %v781_v60 = vpop.f32.mrf.mxu2  ;;  %v793_v61 = vpop.f32.mrf.mxu3 }
 0x291   : > { %837 = vst [vmem:[%s1978_s20] sm:$0xff] %v821_v58  ;;  %v813_v62 = vadd.f32 %v781_v60, %v700_v56  ;;  %v817_v63 = vadd.f32 %v793_v61, %v704_v57 }
 0x292   : > { %841 = vst [vmem:[%s1978_s20 + $0x20] sm:$0xff] %v825_v59 }
 0x293   : > { %v829_v2 = vmax.f32 %v813_v62, 0.0  ;;  %v833_v3 = vmax.f32 %v817_v63, 0.0 }
 0x294   : > { %v760_v4 = vpop.f32.mrf.mxu0  ;;  %v772_v5 = vpop.f32.mrf.mxu1 }
 0x295   : > { %845 = vst [vmem:[%s1978_s20 + $0x40] sm:$0xff] %v829_v2  ;;  %v806_v6 = vadd.f32 %v760_v4, %v693_v0  ;;  %v810_v7 = vadd.f32 %v772_v5, %v697_v1 }
 0x296   : > { %849 = vst [vmem:[%s1978_s20 + $0x60] sm:$0xff] %v833_v3 }
 0x297   : > { %v822_v10 = vmax.f32 %v806_v6, 0.0  ;;  %v826_v11 = vmax.f32 %v810_v7, 0.0 }
 0x298   : > { %v784_v12 = vpop.f32.mrf.mxu2  ;;  %v796_v13 = vpop.f32.mrf.mxu3 }
 0x299   : > { %838 = vst [vmem:[%s1978_s20 + $0x8] sm:$0xff] %v822_v10  ;;  %v814_v14 = vadd.f32 %v784_v12, %v701_v8  ;;  %v818_v15 = vadd.f32 %v796_v13, %v705_v9 }
 0x29a   : > { %842 = vst [vmem:[%s1978_s20 + $0x28] sm:$0xff] %v826_v11 }
 0x29b   : > { %v830_v18 = vmax.f32 %v814_v14, 0.0  ;;  %v834_v19 = vmax.f32 %v818_v15, 0.0 }
 0x29c   : > { %v763_v20 = vpop.f32.mrf.mxu0  ;;  %v775_v21 = vpop.f32.mrf.mxu1 }
 0x29d   : > { %846 = vst [vmem:[%s1978_s20 + $0x48] sm:$0xff] %v830_v18  ;;  %v807_v22 = vadd.f32 %v763_v20, %v694_v16  ;;  %v811_v23 = vadd.f32 %v775_v21, %v698_v17 }
 0x29e   : > { %850 = vst [vmem:[%s1978_s20 + $0x68] sm:$0xff] %v834_v19 }
 0x29f   : > { %v823_v26 = vmax.f32 %v807_v22, 0.0  ;;  %v827_v27 = vmax.f32 %v811_v23, 0.0 }
 0x2a0   : > { %v787_v28 = vpop.f32.mrf.mxu2  ;;  %v799_v29 = vpop.f32.mrf.mxu3 }
 0x2a1   : > { %839 = vst [vmem:[%s1978_s20 + $0x10] sm:$0xff] %v823_v26  ;;  %v815_v30 = vadd.f32 %v787_v28, %v702_v24  ;;  %v819_v31 = vadd.f32 %v799_v29, %v706_v25 }
 0x2a2   : > { %843 = vst [vmem:[%s1978_s20 + $0x30] sm:$0xff] %v827_v27 }
 0x2a3   : > { %v831_v34 = vmax.f32 %v815_v30, 0.0  ;;  %v835_v35 = vmax.f32 %v819_v31, 0.0 }
 0x2a4   : > { %v766_v36 = vpop.f32.mrf.mxu0  ;;  %v778_v37 = vpop.f32.mrf.mxu1 }
 0x2a5   : > { %847 = vst [vmem:[%s1978_s20 + $0x50] sm:$0xff] %v831_v34  ;;  %v808_v38 = vadd.f32 %v766_v36, %v695_v32  ;;  %v812_v39 = vadd.f32 %v778_v37, %v699_v33 }
 0x2a6   : > { %851 = vst [vmem:[%s1978_s20 + $0x70] sm:$0xff] %v835_v35 }
 0x2a7   : > { %v824_v42 = vmax.f32 %v808_v38, 0.0  ;;  %v828_v43 = vmax.f32 %v812_v39, 0.0 }
 0x2a8   : > { %v790_v44 = vpop.f32.mrf.mxu2  ;;  %v802_v45 = vpop.f32.mrf.mxu3 }
 0x2a9   : > { %840 = vst [vmem:[%s1978_s20 + $0x18] sm:$0xff] %v824_v42  ;;  %v816_v46 = vadd.f32 %v790_v44, %v703_v40  ;;  %v820_v47 = vadd.f32 %v802_v45, %v707_v41 }
 0x2aa   : > { %844 = vst [vmem:[%s1978_s20 + $0x38] sm:$0xff] %v828_v43 }
 0x2ab   : > { %v832_v48 = vmax.f32 %v816_v46, 0.0  ;;  %v836_v49 = vmax.f32 %v820_v47, 0.0 }
 0x2ad   : > { %848 = vst [vmem:[%s1978_s20 + $0x58] sm:$0xff] %v832_v48 }
 0x2ae   : > { %852 = vst [vmem:[%s1978_s20 + $0x78] sm:$0xff] %v836_v49 }
 0x2af PF: > { %s2200_s18 = sld [smem:[#allocation20_spill]]  ;;  %s866_s0 = sshll.u32 %s1978_s20, 4  ;;  %s867_s0 = int_to_ptr.vmem [resolvable:$true] %s866_s0 }
 0x2b0   : > { %s2201_s12 = sld [smem:[#allocation31_spill]]  ;;  %s854_s15 = scalar_lea.sflag [#allocation5], %s350_s3 }
 0x2b5   : > { %s1050_s8 = sshll.u32 %s2200_s18, 7 }
 0x2b6   : > { %s865_s17 = scalar_lea.hbm %s2201_s12, %s1050_s8  ;;  %s1529_s11 = scalar_lea.hbm %s2201_s12, 256 }
 0x2b7   : > { %s868_s1 = sshll.u32 %s865_s17, 4  ;;  %s869_s1 = int_to_ptr.hbm [resolvable:$true] %s868_s1 }
 0x2b8   : > { %s1523_s16 = sshra.s32 %s869_s1, 4  ;;  %s1524_s16 = int_to_ptr.hbm [resolvable:$true] %s1523_s16 }
 0x2b9   : > { %s1525_s5 = scalar_lea.hbm %s1524_s16, 128  ;;  %p1530_p13 = scmp.lt.s32.totalorder %s1524_s16, %s2201_s12 }
 0x2ba   : > { %p1526_p8 = scmp.ne.s32.totalorder %s1524_s16, %s1525_s5  ;;  %p1531_p7 = scmp.lt.s32.totalorder %s1529_s11, %s1525_s5 }
 0x2bc   : > { %p1527_p0 = pnand %p1526_p8, %p1921_p11  ;;  %p1532_p9 = por %p1531_p7, %p1530_p13 }
 0x2be   : > { %p1528_p3 = pneg %p1527_p0 }
 0x2c0   : > { %p1533_p10 = pnand %p1532_p9, %p1528_p3 }
 0x2c2   : > { %1536 = shalt.err (!%p1533_p10)
}
 0x2c3   : > { %s1675_s3 = smov 128   ;;  %s1676_s20 = smov 8  }
 0x2c4   : > { %1209 = dma.vmem_to_hbm [thread:$0]  (%p1921_p11), %s867_s0, 2048, %s869_s1, %s854_s15, %s1675_s3, %s1675_s3, %s1676_s20  }
 0x2c5 PF: > { %p1237_p12 = scmp.ge.s32.totalorder %s1667_s10, 2  ;;  %s883_s24 = sand.u32 1, %s1615_s21  }
 0x2c6   : > { %s884_s18 = scalar_lea.sflag [#allocation5], %s883_s24 }
 0x2c7   : > { %p1229_p6 = pnand %p1237_p12, %p1932_p5 }
 0x2c9   : > { %p1230_p2 = pneg %p1229_p6 }
 0x2cb   : > { %1610 = dma.done.wait (%p1230_p2), %s884_s18, 2048  }
 0x2cc   : > { %1612 = vsyncadd (%p1230_p2), %s884_s18, 4294965248  ;;  %s26_s10 = sadd.s32 1, %s1667_s10   ;;  %s2203_s24 = sld [smem:[#allocation18_spill]] }
 0x2cd   : > { %p2103_p4 = scmp.ge.s32.totalorder %s26_s10, 6   ;;  %s2204_s6 = sld [smem:[#allocation24_spill]] }
 0x2ce   : > { %s2205_s19 = sld [smem:[#allocation25_spill]]  ;;  %s2210_s21 = smov %s1619_s22 }
 0x2cf   : > { %s2206_s30 = sld [smem:[#allocation21_spill]]  ;;  %s2211_s22 = smov %s1623_s23 }
 0x2d0   : > { %s2207_s17 = sld [smem:[#allocation22_spill]]  ;;  %s2212_s23 = smov %s1909_s27 }
 0x2d1   : > { %s2208_s0 = sld [smem:[#allocation23_spill]]  ;;  %s2213_s25 = smov %s1635_s26 }
 0x2d2   : > { %s2215_s27 = smov %s1643_s28  ;;  %s2216_s28 = smov %s1647_s29 }
 0x2d3   : > { %s2214_s26 = smov %s2204_s6  ;;  %s2218_s7 = smov %s1663_s9 }
 0x2d4   : > { %s2217_s29 = smov %s2205_s19  ;;  %25 = sbr.rel (!%p2103_p4) target bundleno = 20 (0x14), region = 129 }
 0x2d6   : > { %s2219_s8 = smov %s2207_s17 }
 0x2d7   : > { %s2220_s9 = smov %s2208_s0 }
 0x2d9   :  { %890 = vsyncpa [#allocation4], 1 }
 0x2da   :  { %892 = vsyncpa [#allocation4 + $0x1], 1 }
 0x2db   :  { %893 = vsyncpa [#allocation7], 1 }
 0x2dc   :  { %895 = vsyncpa [#allocation7 + $0x1], 1 }
 0x2dd   :  { %896 = vsyncpa [#allocation10], 1 }
 0x2de   :  { %897 = vsyncpa [#allocation5], 1 }
 0x2df   :  { %899 = vsyncpa [#allocation5 + $0x1], 1 }

</bundles_post_ra>
